<compile_context>
chip_gen: v5e
topology: v5e:2x2
jax: 0.10.0
libtpu: 0.0.40
codegen_flags: <defaults>
</compile_context>

<pallas_src>
import jax
import jax.numpy as jnp
from jax.experimental import pallas as pl
from jax.experimental.pallas import tpu as pltpu


def _round_up(x: int, m: int) -> int:
    return ((x + m - 1) // m) * m


def _cdiv(a: int, b: int) -> int:
    return -(-a // b)


def _head_kernel(w_ref, x_ref, b_ref, o_ref):
    # w_ref: (c_out_p8, C)       f32  normalize-folded head weight (VMEM resident)
    # x_ref: (C, tile_n)         f32  activation tile, N on the lane dim
    # b_ref: (c_out_p8, 1)       f32  normalize-folded bias (VMEM resident)
    # o_ref: (c_out_p8, tile_n)  f32  lane-dense output tile -> unmasked stores
    o_ref[...] = (
        jnp.dot(w_ref[...], x_ref[...], preferred_element_type=jnp.float32)
        + b_ref[...]
    )


def ios_detect_forward(x, w, b, normalize, nc, *, tile_n=8192, interpret=False):
    """Pallas implementation of IOSDetectModel.forward.

    Args:
      x: (B, C, H, W) float32 batch (NCHW).  Only batch element 0 is used,
         matching `self.model(x)[0]` in the PyTorch reference.
      w: (C, 4 + nc) float32 head weight (synthesized per-pixel linear head).
      b: (4 + nc,)   float32 head bias.
      normalize: scalar 1/w (square image) or (4,) array [1/w, 1/h, 1/w, 1/h].
      nc: number of classes (static).
      tile_n: requested pixels per grid step (rounded to a multiple of 128 and
              clamped to a VMEM budget; no divisibility requirement on N).

    Returns:
      (cls, xywh_scaled): shapes (N, nc) and (N, 4), N = H * W.
    """
    B, C, H, W = x.shape
    N = H * W
    c_out = 4 + nc
    c_out_p8 = _round_up(c_out, 8)        # sublane-aligned output rows only

    # --- fold `normalize` into the xywh rows of the transposed weight / bias ---
    norm4 = jnp.broadcast_to(jnp.asarray(normalize, jnp.float32).reshape(-1), (4,))
    w_t = w.astype(jnp.float32).T                                      # (c_out, C)
    w_t = jnp.concatenate([w_t[:4] * norm4[:, None], w_t[4:]], axis=0)
    b_f = b.astype(jnp.float32)
    b_f = jnp.concatenate([b_f[:4] * norm4, b_f[4:]], axis=0)

    w_pad = jnp.zeros((c_out_p8, C), jnp.float32).at[:c_out, :].set(w_t)
    b_pad = jnp.zeros((c_out_p8, 1), jnp.float32).at[:c_out, 0].set(b_f)

    # Batch element 0 only (faithful to `self.model(x)[0]`; B > 1 is silently
    # ignored exactly as in the PyTorch module).  (C,H,W) -> (C,N) is a
    # contiguous reshape: free view, no transpose / pad / cast.
    x0 = x[0].reshape(C, N)

    # --- tile selection -------------------------------------------------------
    tile_n = max(128, (min(int(tile_n), _round_up(N, 128)) // 128) * 128)
    per_col_bytes = 4 * (C + c_out_p8)           # f32 activation in + f32 out
    budget = 20 * 1024 * 1024                    # double-buffered block budget
    max_cols = max(128, (budget // (2 * per_col_bytes) // 128) * 128)
    tile_n = min(tile_n, max_cols)
    num_tiles = _cdiv(N, tile_n)
    # v7x megacore: prefer an even "parallel" grid so both TensorCores get
    # equal work (no-op on single-TC v5e / v6e).
    if num_tiles > 1 and num_tiles % 2 == 1:
        alt_tile = max(128, _round_up(_cdiv(N, num_tiles + 1), 128))
        if _cdiv(N, alt_tile) % 2 == 0:
            tile_n = alt_tile
            num_tiles = _cdiv(N, alt_tile)

    cost = pl.CostEstimate(
        flops=2 * N * C * c_out_p8,
        transcendentals=0,
        bytes_accessed=4 * (N * C + N * c_out_p8 + c_out_p8 * C + c_out_p8),
    )

    preds = pl.pallas_call(
        _head_kernel,
        out_shape=jax.ShapeDtypeStruct((c_out_p8, N), jnp.float32),
        grid_spec=pltpu.PrefetchScalarGridSpec(
            num_scalar_prefetch=0,
            grid=(num_tiles,),
            in_specs=[
                # Weight: full extent, constant block index -> VMEM resident.
                pl.BlockSpec((c_out_p8, C), lambda i: (0, 0)),
                # Activation: tiled along N (lane dim) only.
                pl.BlockSpec((C, tile_n), lambda i: (0, i)),
                # Bias: full extent, constant block index -> VMEM resident.
                pl.BlockSpec((c_out_p8, 1), lambda i: (0, 0)),
            ],
            out_specs=pl.BlockSpec((c_out_p8, tile_n), lambda i: (0, i)),
        ),
        compiler_params=pltpu.CompilerParams(
            dimension_semantics=("parallel",),
            vmem_limit_bytes=32 * 1024 * 1024,   # covers v5e's 16 MiB default
        ),
        cost_estimate=cost,
        interpret=interpret,
    )(w_pad, x0, b_pad)

    # De-pad rows + the module's transpose/split, done once in the wrapper on a
    # tiny (c_out, N) slab (normalize is already folded into the kernel output).
    preds_nc = preds[:c_out, :].T                # (N, 4 + nc)
    xywh_scaled = preds_nc[:, :4]
    cls = preds_nc[:, 4:]
    return cls, xywh_scaled


if __name__ == "__main__":
    # Small deterministic example consistent with the module:
    # batch=2 NCHW images, 4 channels, 16x16 spatial, nc=8 classes.
    B, C, H, W = 2, 4, 16, 16
    nc = 8
    N = H * W

    key = jax.random.PRNGKey(0)
    kx, kw, kb = jax.random.split(key, 3)
    x = jax.random.normal(kx, (B, C, H, W), dtype=jnp.float32)
    w = jax.random.normal(kw, (C, 4 + nc), dtype=jnp.float32) * 0.1
    b = jax.random.normal(kb, (4 + nc,), dtype=jnp.float32) * 0.1

    # Square image -> scalar normalize, exactly like the PyTorch module.
    normalize = (1.0 / W) if H == W else jnp.array(
        [1.0 / W, 1.0 / H, 1.0 / W, 1.0 / H], dtype=jnp.float32)

    fwd = jax.jit(ios_detect_forward, static_argnums=(4,))
    cls, xywh = fwd(x, w, b, normalize, nc)
    cls, xywh = jax.block_until_ready((cls, xywh))

    # Pure-JAX f32 reference of the same forward.  The kernel keeps both
    # operands in f32 (precision concern from the review), so tolerance is
    # tight; a small margin covers MXU accumulation-order differences.
    preds_ref = x[0].reshape(C, N).T @ w + b                  # (N, 4 + nc)
    norm4 = jnp.broadcast_to(
        jnp.asarray(normalize, jnp.float32).reshape(-1), (4,))
    xywh_ref = preds_ref[:, :4] * norm4[None, :]
    cls_ref = preds_ref[:, 4:]

    assert cls.shape == (N, nc), cls.shape
    assert xywh.shape == (N, 4), xywh.shape
    assert bool(jnp.allclose(cls, cls_ref, rtol=5e-3, atol=5e-3))
    assert bool(jnp.allclose(xywh, xywh_ref, rtol=5e-3, atol=5e-3))

    print("KERNEL_OK")
</pallas_src>

<mosaic_0001>
module attributes {stable_mosaic.version = 11 : i64} {
  func.func @_head_kernel(%arg0: i32, %arg1: memref<16x4xf32, #tpu.memory_space<vmem>>, %arg2: memref<4x256xf32, #tpu.memory_space<vmem>>, %arg3: memref<16x1xf32, #tpu.memory_space<vmem>>, %arg4: memref<16x256xf32, #tpu.memory_space<vmem>>) attributes {dimension_semantics = [#tpu.dimension_semantics<parallel>], iteration_bounds = array<i64: 1>, scalar_prefetch = 0 : i64, scratch_operands = 0 : i64, tpu.core_type = #tpu.core_type<tc>, window_params = [{pipeline_mode = #tpu.pipeline_mode<synchronous>, transform_indices = @transform_0, window_bounds = array<i64: 16, 4>}, {transform_indices = @transform_1, window_bounds = array<i64: 4, 256>}, {pipeline_mode = #tpu.pipeline_mode<synchronous>, transform_indices = @transform_2, window_bounds = array<i64: 16, 1>}, {transform_indices = @transform_3, window_bounds = array<i64: 16, 256>}]} {
    %c0 = arith.constant 0 : index
    %c0_0 = arith.constant 0 : index
    %0 = vector.load %arg1[%c0, %c0_0] : memref<16x4xf32, #tpu.memory_space<vmem>>, vector<16x4xf32>
    %c0_1 = arith.constant 0 : index
    %c0_2 = arith.constant 0 : index
    %1 = vector.load %arg2[%c0_1, %c0_2] : memref<4x256xf32, #tpu.memory_space<vmem>>, vector<4x256xf32>
    %cst = arith.constant dense<0.000000e+00> : vector<16x256xf32>
    %2 = tpu.matmul %0, %1, %cst {dimension_numbers = #tpu.dot_dimension_numbers<[1], [0], [0], [1], [0, 0, 1, 1], [], []>} : vector<16x4xf32>, vector<4x256xf32>, vector<16x256xf32> -> vector<16x256xf32>
    %c0_3 = arith.constant 0 : index
    %c0_4 = arith.constant 0 : index
    %3 = vector.load %arg3[%c0_3, %c0_4] : memref<16x1xf32, #tpu.memory_space<vmem>>, vector<16x1xf32>
    %4 = vector.broadcast %3 : vector<16x1xf32> to vector<16x256xf32>
    %5 = arith.addf %2, %4 : vector<16x256xf32>
    %c0_5 = arith.constant 0 : index
    %c0_6 = arith.constant 0 : index
    %6 = vector.load %arg4[%c0_5, %c0_6] : memref<16x256xf32, #tpu.memory_space<vmem>>, vector<16x256xf32>
    tpu.vector_store %arg4[%c0_5, %c0_6], %5 {strides = array<i32>} : memref<16x256xf32, #tpu.memory_space<vmem>>, vector<16x256xf32>,
    return
  }
  func.func @transform_0(%arg0: i32) -> (i32, i32) {
    %c0_i32 = arith.constant 0 : i32
    %c0_i32_0 = arith.constant 0 : i32
    %c0_i32_1 = arith.constant 0 : i32
    return %c0_i32, %c0_i32_0 : i32, i32
  }
  func.func @transform_1(%arg0: i32) -> (i32, i32) {
    %c0_i32 = arith.constant 0 : i32
    %c0_i32_0 = arith.constant 0 : i32
    return %c0_i32, %arg0 : i32, i32
  }
  func.func @transform_2(%arg0: i32) -> (i32, i32) {
    %c0_i32 = arith.constant 0 : i32
    %c0_i32_0 = arith.constant 0 : i32
    %c0_i32_1 = arith.constant 0 : i32
    return %c0_i32, %c0_i32_0 : i32, i32
  }
  func.func @transform_3(%arg0: i32) -> (i32, i32) {
    %c0_i32 = arith.constant 0 : i32
    %c0_i32_0 = arith.constant 0 : i32
    return %c0_i32, %arg0 : i32, i32
  }
}

</mosaic_0001>

<bundles_post_ra>
// kernel: squeeze.1
= control target key start
LH: loop header
LB: loop body
LE: loop exit
PB: predicated region body
PF: predicated region fallthrough
CT: control target
= control target key end

     0   :  { %s15_s6 = smov 3  ;;  %s18_s7 = smov 12  ;;  %vm20_vm0 = vcmask 1043458   ;;  %vm25_vm1 = vcmask 1045508   ;;  %vm30_vm2 = vcmask 1047558   ;;  %vm4_vm3 = vcmask 1047556   ;;  %s364_s0 = inlined_call_operand.vmem [shape: f32[1,4,16,16], index: 0, kind: input, shape index: {}]   ;;  %s365_s1 = inlined_call_operand.vmem [shape: f32[4,256], index: 1, kind: output, shape index: {}]  }
   0x1   :  { %v194_v0 = vld [vmem:[%s364_s0 + $0x7] ss:$16 sm:%s15_s6]   ;;  %s23_s12 = smov 48  ;;  %s28_s13 = smov 192  ;;  %vm6_vm4 = vcmask 130048   ;;  %vm34_vm5 = vcmask 1048448  }
   0x2   :  { %v195_v1 = vld [vmem:[%s364_s0 + $0x7] ss:$16 sm:%s18_s7]   ;;  %v196_v3 = vld [vmem:[%s364_s0 - $0x31] ss:$16 sm:%s23_s12]   ;;  %s63_s18 = smov 3  ;;  %s66_s21 = smov 12 }
   0x3   :  { %v21_v2 = vsel %vm20_vm0, %v195_v1, %v194_v0  ;;  %v197_v4 = vld [vmem:[%s364_s0 - $0x31] ss:$16 sm:%s28_s13]   ;;  %v202_v6 = vld [vmem:[%s364_s0 + $0x5] ss:$16 sm:%s63_s18]   ;;  %s71_s22 = smov 48  ;;  %s76_s27 = smov 192 }
   0x4   :  { %v26_v5 = vsel %vm25_vm1, %v196_v3, %v21_v2  ;;  %v203_v8 = vld [vmem:[%s364_s0 + $0x5] ss:$16 sm:%s66_s21]   ;;  %v204_v9 = vld [vmem:[%s364_s0 - $0x33] ss:$16 sm:%s71_s22]   ;;  %s230_s28 = smov 112   ;;  %s39_s2 = smov 3 }
   0x5   :  { %v31_v7 = vsel %vm30_vm2, %v197_v4, %v26_v5  ;;  %v69_v10 = vsel %vm20_vm0, %v203_v8, %v202_v6  ;;  %v205_v11 = vld [vmem:[%s364_s0 - $0x33] ss:$16 sm:%s76_s27]   ;;  %s42_s3 = smov 12  ;;  %v198_v13 = vld [vmem:[%s364_s0 + $0x6] ss:$16 sm:%s39_s2]   ;;  %s47_s8 = smov 48 }
   0x6   :  { %32 = vrot.lane.b32.xlu0 %v31_v7, %s230_s28  ;;  %v74_v12 = vsel %vm25_vm1, %v204_v9, %v69_v10  ;;  %v199_v14 = vld [vmem:[%s364_s0 + $0x6] ss:$16 sm:%s42_s3]   ;;  %s52_s9 = smov 192  ;;  %s87_s14 = smov 3  ;;  %vm58_vm6 = vcmask 917248   ;;  %vm82_vm7 = vcmask 786048  }
   0x7   :  { %v79_v15 = vsel %vm30_vm2, %v205_v11, %v74_v12  ;;  %v45_v16 = vsel %vm20_vm0, %v199_v14, %v198_v13  ;;  %v200_v17 = vld [vmem:[%s364_s0 - $0x32] ss:$16 sm:%s47_s8]   ;;  %s231_s15 = smov 80   ;;  %v206_v20 = vld [vmem:[%s364_s0 + $0x4] ss:$16 sm:%s87_s14]   ;;  %s90_s18 = smov 12 }
   0x8   :  { %v201_v18 = vld [vmem:[%s364_s0 - $0x32] ss:$16 sm:%s52_s9]   ;;  %80 = vrot.lane.b32.xlu1 %v79_v15, %s231_s15  ;;  %v50_v19 = vsel %vm25_vm1, %v200_v17, %v45_v16  ;;  %s95_s19 = smov 48  ;;  %s100_s24 = smov 192  ;;  %vm106_vm8 = vcmask 654848   ;;  %vm130_vm9 = vcmask 523648  }
   0x9   :  { %v207_v21 = vld [vmem:[%s364_s0 + $0x4] ss:$16 sm:%s90_s18]   ;;  %v208_v22 = vld [vmem:[%s364_s0 - $0x34] ss:$16 sm:%s95_s19]   ;;  %v55_v23 = vsel %vm30_vm2, %v201_v18, %v50_v19  ;;  %s159_s27 = smov 3  ;;  %s162_s28 = smov 12 }
   0xa   :  { %v93_v24 = vsel %vm20_vm0, %v207_v21, %v206_v20  ;;  %v209_v25 = vld [vmem:[%s364_s0 - $0x34] ss:$16 sm:%s100_s24]   ;;  %v218_v27 = vld [vmem:[%s364_s0 + $0x1] ss:$16 sm:%s159_s27]   ;;  %s167_s4 = smov 48  ;;  %s172_s7 = smov 192 }
   0xb   :  { %v98_v26 = vsel %vm25_vm1, %v208_v22, %v93_v24  ;;  %v219_v28 = vld [vmem:[%s364_s0 + $0x1] ss:$16 sm:%s162_s28]   ;;  %v220_v30 = vld [vmem:[%s364_s0 - $0x37] ss:$16 sm:%s167_s4]   ;;  %s111_s8 = smov 3  ;;  %s232_s9 = smov 96  }
   0xc   :  { %v165_v29 = vsel %vm20_vm0, %v219_v28, %v218_v27  ;;  %v103_v31 = vsel %vm30_vm2, %v209_v25, %v98_v26  ;;  %v210_v32 = vld [vmem:[%s364_s0 + $0x3] ss:$16 sm:%s111_s8]   ;;  %s114_s12 = smov 12  ;;  %s119_s13 = smov 48  ;;  %v221_v36 = vld [vmem:[%s364_s0 - $0x37] ss:$16 sm:%s172_s7]  }
   0xd   :  { %v211_v33 = vld [vmem:[%s364_s0 + $0x3] ss:$16 sm:%s114_s12]   ;;  %v212_v34 = vld [vmem:[%s364_s0 - $0x35] ss:$16 sm:%s119_s13]   ;;  %s124_s18 = smov 192  ;;  %v170_v35 = vsel %vm25_vm1, %v220_v30, %v165_v29  ;;  %s135_s23 = smov 3 }
   0xe   :  { %56 = vrot.lane.b32.xlu0 %v55_v23, %s232_s9  ;;  %v117_v37 = vsel %vm20_vm0, %v211_v33, %v210_v32  ;;  %v213_v38 = vld [vmem:[%s364_s0 - $0x35] ss:$16 sm:%s124_s18]   ;;  %s138_s24 = smov 12  ;;  %s233_s25 = smov 64   ;;  %v175_v44 = vsel %vm30_vm2, %v221_v36, %v170_v35  ;;  %vm154_vm10 = vcmask 392448   ;;  %vm178_vm11 = vcmask 261248  }
   0xf   :  { %v122_v39 = vsel %vm25_vm1, %v212_v34, %v117_v37  ;;  %v214_v40 = vld [vmem:[%s364_s0 + $0x2] ss:$16 sm:%s135_s23]   ;;  %s143_s28 = smov 48  ;;  %s148_s4 = smov 192 }
  0x10   :  { %104 = vrot.lane.b32.xlu1 %v103_v31, %s233_s25  ;;  %v127_v41 = vsel %vm30_vm2, %v213_v38, %v122_v39  ;;  %v215_v42 = vld [vmem:[%s364_s0 + $0x2] ss:$16 sm:%s138_s24]   ;;  %s234_s5 = smov 48   ;;  %s235_s8 = smov 16  }
  0x11   :  { %v216_v43 = vld [vmem:[%s364_s0 - $0x36] ss:$16 sm:%s143_s28]   ;;  %128 = vrot.lane.b32.xlu2 %v127_v41, %s234_s5  ;;  %v141_v45 = vsel %vm20_vm0, %v215_v42, %v214_v40  ;;  %s236_s9 = smov 32   ;;  %v2_v49 = vld [vmem:[%s364_s0] ss:$8 sm:$0xf]  }
  0x12   :  { %v146_v46 = vsel %vm25_vm1, %v216_v43, %v141_v45  ;;  %v217_v47 = vld [vmem:[%s364_s0 - $0x36] ss:$16 sm:%s148_s4]   ;;  %v3_v50 = vld [vmem:[%s364_s0] ss:$8 sm:$0xf0]  }
  0x13   :  { %v151_v48 = vsel %vm30_vm2, %v217_v47, %v146_v46  ;;  %v5_v51 = vsel %vm4_vm3, %v3_v50, %v2_v49 }
  0x14   :  { %7 = vst.msk [vmem:[#allocation0] ss:$8 sm:$0x3] %vm6_vm4, %v5_v51  }
  0x15   :  { %9 = vst.msk [vmem:[#allocation0 - $0xf] ss:$8 sm:$0xc] %vm6_vm4, %v5_v51  }
  0x16   :  { %176 = vrot.lane.b32.xlu0 %v175_v44, %s235_s8  ;;  %11 = vst.msk [vmem:[#allocation0 - $0x1e] ss:$8 sm:$0x30] %vm6_vm4, %v5_v51  }
  0x17   :  { %13 = vst.msk [vmem:[#allocation0 - $0x2d] ss:$8 sm:$0xc0] %vm6_vm4, %v5_v51  }
  0x19   :  { %152 = vrot.lane.b32.xlu2 %v151_v48, %s236_s9 }
  0x6b   :  { %v129_v52 = vpop.permute.xlu2 %128  }
  0x73   :  { %v153_v53 = vpop.permute.xlu2 %152  }
  0x78   :  { %v33_v54 = vpop.permute.xlu0 %32  }
  0x79   :  { %35 = vst.msk [vmem:[#allocation0] sm:$0xf] %vm34_vm5, %v33_v54  }
  0x7a   :  { %37 = vst.msk [vmem:[#allocation0 + $0x4] sm:$0xf0] %vm34_vm5, %v33_v54   ;;  %v81_v55 = vpop.permute.xlu1 %80  }
  0x80   :  { %v57_v56 = vpop.permute.xlu0 %56  }
  0x81   :  { %59 = vst.msk [vmem:[#allocation0] sm:$0xf] %vm58_vm6, %v57_v56  }
  0x82   :  { %61 = vst.msk [vmem:[#allocation0 + $0x4] sm:$0xf0] %vm58_vm6, %v57_v56   ;;  %v105_v57 = vpop.permute.xlu1 %104  }
  0x83   :  { %83 = vst.msk [vmem:[#allocation0] sm:$0xf] %vm82_vm7, %v81_v55  }
  0x84   :  { %85 = vst.msk [vmem:[#allocation0 + $0x4] sm:$0xf0] %vm82_vm7, %v81_v55  }
  0x85   :  { %107 = vst.msk [vmem:[#allocation0] sm:$0xf] %vm106_vm8, %v105_v57  }
  0x86   :  { %109 = vst.msk [vmem:[#allocation0 + $0x4] sm:$0xf0] %vm106_vm8, %v105_v57  }
  0x87   :  { %131 = vst.msk [vmem:[#allocation0] sm:$0xf] %vm130_vm9, %v129_v52  }
  0x88   :  { %133 = vst.msk [vmem:[#allocation0 + $0x4] sm:$0xf0] %vm130_vm9, %v129_v52   ;;  %v177_v58 = vpop.permute.xlu0 %176  }
  0x89   :  { %155 = vst.msk [vmem:[#allocation0] sm:$0xf] %vm154_vm10, %v153_v53  }
  0x8a   :  { %157 = vst.msk [vmem:[#allocation0 + $0x4] sm:$0xf0] %vm154_vm10, %v153_v53  }
  0x8b   :  { %179 = vst.msk [vmem:[#allocation0] sm:$0xf] %vm178_vm11, %v177_v58  }
  0x8c   :  { %181 = vst.msk [vmem:[#allocation0 + $0x4] sm:$0xf0] %vm178_vm11, %v177_v58  }
  0x92   :  { %v184_v59 = vld [vmem:[#allocation0] sm:$0xf] }
  0x93   :  { %187 = vst [vmem:[%s365_s1] sm:$0xf] %v184_v59  ;;  %v189_v60 = vld [vmem:[#allocation0 + $0x8] sm:$0xf] }
  0x94   :  { %222 = vst [vmem:[%s365_s1 + $0x4] sm:$0xf] %v189_v60 }

// kernel: ios_detect_forward.1
= control target key start
LH: loop header
LB: loop body
LE: loop exit
PB: predicated region body
PF: predicated region fallthrough
CT: control target
= control target key end

     0   :  { %v109_v1 = vmov 0   ;;  %vm40_vm0 = vcmask 1043456   ;;  %vm33_vm1 = vcmask 31744   ;;  %s157_s1 = inlined_call_operand.vmem [shape: f32[4,256], index: 1, kind: input, shape index: {}]   ;;  %s158_s2 = inlined_call_operand.vmem [shape: f32[16,1], index: 2, kind: input, shape index: {}]   ;;  %s159_s0 = inlined_call_operand.vmem [shape: f32[16,4], index: 0, kind: input, shape index: {}]   ;;  %s160_s3 = inlined_call_operand.vmem [shape: f32[16,256], index: 3, kind: output, shape index: {}]  }
   0x1   :  { %v16_v0 = vld [vmem:[%s157_s1] sm:$0xff]  ;;  %108 = vset.pattern.permute.xlu0 %v109_v1  ;;  %v15_v4 = vld [vmem:[%s159_s0 + $0x8] sm:$0xff] }
   0x2   :  { %30 = vst [vmem:[#allocation1] ss:$2 sm:$0xff] %v16_v0  ;;  %v17_v2 = vld [vmem:[%s158_s2] sm:$0xff]  ;;  %v18_v7 = vld [vmem:[%s158_s2 + $0x8] sm:$0xff] }
   0x3   :  { %21 = vperm.xlu0 %108, %v17_v2   ;;  %v14_v3 = vld [vmem:[%s159_s0] sm:$0xff] }
   0x9   :  { %v31_v5 = vld.sshfl [vmem:[#allocation1] sm:$0xff pattern:$0x75316420]  ;;  %v32_v6 = vld.sshfl [vmem:[#allocation1 + $0x8] sm:$0xff pattern:$0x75316420] }
   0xa   :  { %99 = vmatpush.msk.msra.mxu0 %vm40_vm0, %v31_v5  ;;  %105 = vmatpush.msk.msra.mxu2 %vm40_vm0, %v31_v5 }
   0xb   :  { %102 = vmatpush.msk.msra.mxu1 %vm40_vm0, %v32_v6  ;;  %106 = vmatpush.msk.msra.mxu3 %vm40_vm0, %v32_v6 }
   0xc   :  { %100 = vmatmul.msk.f32.vlgmr.msra.gmra.mxu0 %vm33_vm1, %v14_v3  ;;  %101 = vmatmul.msk.f32.vlgmr.msra.gmra.mxu2 %vm33_vm1, %v15_v4 }
   0xd   :  { %103 = vmatmul.msk.f32.vlgmr.msra.gmra.mxu1 %vm33_vm1, %v14_v3  ;;  %104 = vmatmul.msk.f32.vlgmr.msra.gmra.mxu3 %vm33_vm1, %v15_v4 }
   0xe   :  { %26 = vperm.xlu0 %108, %v18_v7  }
  0x75   :  { %v22_v8 = vpop.permute.xlu0 %21 }
  0x80   :  { %v27_v13 = vpop.permute.xlu0 %26 }
  0x89   :  { %v62_v9 = vpop.f32.mrf.mxu0 }
  0x8a   :  { %v63_v10 = vadd.f32 %v62_v9, %v22_v8  ;;  %v85_v11 = vpop.f32.mrf.mxu1 }
  0x8b   :  { %v86_v12 = vadd.f32 %v85_v11, %v22_v8 }
  0x8c   :  { %91 = vst [vmem:[%s160_s3] sm:$0xff] %v63_v10 }
  0x8d   :  { %92 = vst [vmem:[%s160_s3 + $0x8] sm:$0xff] %v86_v12 }
  0x8f   :  { %v65_v14 = vpop.f32.mrf.mxu2 }
  0x90   :  { %v66_v15 = vadd.f32 %v65_v14, %v27_v13  ;;  %v88_v16 = vpop.f32.mrf.mxu3 }
  0x91   :  { %v89_v17 = vadd.f32 %v88_v16, %v27_v13 }
  0x92   :  { %93 = vst [vmem:[%s160_s3 + $0x10] sm:$0xff] %v66_v15 }
  0x93   :  { %94 = vst [vmem:[%s160_s3 + $0x18] sm:$0xff] %v89_v17 }

</bundles_post_ra>
